<compile_context>
chip_gen: v7x
topology: tpu7x:2x2x1
jax: 0.10.0
libtpu: 0.0.40
codegen_flags: <defaults>
</compile_context>

<pallas_src>
import jax
import jax.numpy as jnp
import numpy as np
from jax.experimental import pallas as pl
from jax.experimental.pallas import tpu as pltpu


def _aggregator_kernel(idx_ref, edges_ref, out_ref, acc_ref):
    # idx_ref:   (1, TE)   int32   (padded slots hold -1)
    # edges_ref: (TE, TF)  float
    # out_ref:   (TN, TF)  float   (resident across the k reduction axis)
    # acc_ref:   (TN, TF)  float32 VMEM scratch accumulator
    i = pl.program_id(0)
    k = pl.program_id(2)

    @pl.when(k == 0)
    def _():
        acc_ref[...] = jnp.zeros_like(acc_ref)

    tn = acc_ref.shape[0]
    te = edges_ref.shape[0]

    idx = idx_ref[...]  # (1, TE)
    # node_ids[r, e] = i*TN + r ; compare against edge indices broadcast on rows.
    node_ids = jax.lax.broadcasted_iota(jnp.int32, (tn, te), 0) + i * tn
    mask = (node_ids == idx).astype(edges_ref.dtype)  # (TN, TE) one-hot^T tile

    # Per-tile segment-sum as an MXU matmul, accumulated in f32.
    acc_ref[...] += jnp.dot(
        mask, edges_ref[...], preferred_element_type=jnp.float32
    )

    @pl.when(k == pl.num_programs(2) - 1)
    def _():
        out_ref[...] = acc_ref[...].astype(out_ref.dtype)


def _round_up(x, m):
    return ((x + m - 1) // m) * m


def _choose_tile(dim_padded, base, max_tile):
    """Largest multiple of `base` <= max_tile that divides `dim_padded`."""
    t = (max_tile // base) * base
    while t > base:
        if dim_padded % t == 0:
            return t
        t -= base
    return base


def aggregate(edges, nodes, receivers, senders, mode):
    """Pallas implementation of Aggregator(mode).forward(graph)."""
    if mode == "receivers":
        indices = receivers
    elif mode == "senders":
        indices = senders
    else:
        raise AttributeError("invalid parameter `mode`")

    n_edges, n_feat = edges.shape
    n_nodes = nodes.shape[0]
    dtype = edges.dtype

    # ----- pad to hardware-friendly sizes and pick tiles -----
    n_feat_p = _round_up(n_feat, 128)
    tf = _choose_tile(n_feat_p, 128, 512)        # feature tile (lanes)
    n_nodes_p = _round_up(n_nodes, 8)
    tn = _choose_tile(n_nodes_p, 8, 256)         # node tile (MXU output rows)
    n_edges_p = _round_up(n_edges, 128)
    te = _choose_tile(n_edges_p, 128, 512)       # edge/reduction tile

    edges_p = jnp.pad(
        edges, ((0, n_edges_p - n_edges), (0, n_feat_p - n_feat))
    )
    # Sentinel -1 for padded edge slots: never matches any node id.
    idx_p = jnp.pad(
        indices.astype(jnp.int32),
        (0, n_edges_p - n_edges),
        constant_values=-1,
    ).reshape(1, n_edges_p)

    grid = (n_nodes_p // tn, n_feat_p // tf, n_edges_p // te)

    out_p = pl.pallas_call(
        _aggregator_kernel,
        out_shape=jax.ShapeDtypeStruct((n_nodes_p, n_feat_p), dtype),
        grid_spec=pltpu.PrefetchScalarGridSpec(
            num_scalar_prefetch=0,
            grid=grid,
            in_specs=[
                # index slice streams with the edge tiles
                pl.BlockSpec((1, te), lambda i, j, k: (0, k)),
                # edge tile: (reduction, feature)
                pl.BlockSpec((te, tf), lambda i, j, k: (k, j)),
            ],
            # output tile stays resident across the reduction axis k
            out_specs=pl.BlockSpec((tn, tf), lambda i, j, k: (i, j)),
            scratch_shapes=[pltpu.VMEM((tn, tf), jnp.float32)],
        ),
        compiler_params=pltpu.CompilerParams(
            dimension_semantics=("parallel", "parallel", "arbitrary"),
            vmem_limit_bytes=32 * 1024 * 1024,
        ),
    )(idx_p, edges_p)

    return out_p[:n_nodes, :n_feat]


def _reference(edges, indices, n_nodes):
    e_np = np.asarray(edges)
    i_np = np.asarray(indices)
    n_feat = e_np.shape[1]
    return np.stack(
        [
            e_np[i_np == i].sum(axis=0)
            if (i_np == i).any()
            else np.zeros(n_feat, e_np.dtype)
            for i in range(n_nodes)
        ],
        axis=0,
    )


if __name__ == "__main__":
    key = jax.random.PRNGKey(0)

    # (N_nodes, N_edges, N_features): one aligned toy case, one unaligned case
    # that exercises node/edge/feature padding and the -1 sentinel tail mask.
    configs = [(8, 16, 32), (10, 37, 20)]

    for n_nodes, n_edges, n_feat in configs:
        key, k_edges, k_nodes, k_recv, k_send = jax.random.split(key, 5)
        edges = jax.random.normal(k_edges, (n_edges, n_feat), dtype=jnp.float32)
        nodes = jax.random.normal(k_nodes, (n_nodes, n_feat), dtype=jnp.float32)
        receivers = jax.random.randint(
            k_recv, (n_edges,), 0, n_nodes, dtype=jnp.int32
        )
        senders = jax.random.randint(
            k_send, (n_edges,), 0, n_nodes, dtype=jnp.int32
        )

        for mode, idx in (("receivers", receivers), ("senders", senders)):
            out = aggregate(edges, nodes, receivers, senders, mode)
            out = jax.block_until_ready(out)
            ref = _reference(edges, idx, n_nodes)
            np.testing.assert_allclose(
                np.asarray(out), ref, rtol=1e-5, atol=1e-5
            )

    print("KERNEL_OK")
</pallas_src>

<mosaic_0001>
module attributes {stable_mosaic.version = 11 : i64} {
  func.func @_aggregator_kernel(%arg0: i32, %arg1: i32, %arg2: i32, %arg3: memref<1x128xi32, #tpu.memory_space<vmem>>, %arg4: memref<128x128xf32, #tpu.memory_space<vmem>>, %arg5: memref<8x128xf32, #tpu.memory_space<vmem>>, %arg6: memref<8x128xf32, #tpu.memory_space<vmem>>) attributes {dimension_semantics = [#tpu.dimension_semantics<parallel>, #tpu.dimension_semantics<parallel>, #tpu.dimension_semantics<arbitrary>], iteration_bounds = array<i64: 1, 1, 1>, scalar_prefetch = 0 : i64, scratch_operands = 1 : i64, tpu.core_type = #tpu.core_type<tc>, window_params = [{transform_indices = @transform_0, window_bounds = array<i64: 1, 128>}, {transform_indices = @transform_1, window_bounds = array<i64: 128, 128>}, {transform_indices = @transform_2, window_bounds = array<i64: 8, 128>}]} {
    %c0_i32 = arith.constant 0 : i32
    %0 = arith.cmpi eq, %arg2, %c0_i32 : i32
    %1 = arith.extui %0 : i1 to i32
    %c0_i32_0 = arith.constant 0 : i32
    %2 = arith.cmpi ne, %1, %c0_i32_0 : i32
    scf.if %2 {
      %cst_10 = arith.constant 0.000000e+00 : f32
      %20 = vector.broadcast %cst_10 : f32 to vector<8x128xf32>
      %c0_11 = arith.constant 0 : index
      %c0_12 = arith.constant 0 : index
      %21 = vector.load %arg6[%c0_11, %c0_12] : memref<8x128xf32, #tpu.memory_space<vmem>>, vector<8x128xf32>
      tpu.vector_store %arg6[%c0_11, %c0_12], %20 {strides = array<i32>} : memref<8x128xf32, #tpu.memory_space<vmem>>, vector<8x128xf32>,
    } else {
    }
    %c0 = arith.constant 0 : index
    %c0_1 = arith.constant 0 : index
    %3 = vector.load %arg3[%c0, %c0_1] : memref<1x128xi32, #tpu.memory_space<vmem>>, vector<1x128xi32>
    %4 = tpu.iota {dimensions = array<i32: 0>} : vector<8x128xi32>
    %c8_i32 = arith.constant 8 : i32
    %5 = arith.muli %arg0, %c8_i32 : i32
    %6 = vector.broadcast %5 : i32 to vector<8x128xi32>
    %7 = arith.addi %4, %6 : vector<8x128xi32>
    %8 = vector.broadcast %3 : vector<1x128xi32> to vector<8x128xi32>
    %9 = arith.cmpi eq, %7, %8 : vector<8x128xi32>
    %10 = arith.extui %9 : vector<8x128xi1> to vector<8x128xi32>
    %11 = arith.sitofp %10 : vector<8x128xi32> to vector<8x128xf32>
    %c0_2 = arith.constant 0 : index
    %c0_3 = arith.constant 0 : index
    %12 = vector.load %arg6[%c0_2, %c0_3] : memref<8x128xf32, #tpu.memory_space<vmem>>, vector<8x128xf32>
    %c0_4 = arith.constant 0 : index
    %c0_5 = arith.constant 0 : index
    %13 = vector.load %arg4[%c0_4, %c0_5] : memref<128x128xf32, #tpu.memory_space<vmem>>, vector<128x128xf32>
    %cst = arith.constant dense<0.000000e+00> : vector<8x128xf32>
    %14 = tpu.matmul %11, %13, %cst {dimension_numbers = #tpu.dot_dimension_numbers<[1], [0], [0], [1], [0, 0, 1, 1], [], []>} : vector<8x128xf32>, vector<128x128xf32>, vector<8x128xf32> -> vector<8x128xf32>
    %15 = arith.addf %12, %14 : vector<8x128xf32>
    %c0_6 = arith.constant 0 : index
    %c0_7 = arith.constant 0 : index
    %16 = vector.load %arg6[%c0_6, %c0_7] : memref<8x128xf32, #tpu.memory_space<vmem>>, vector<8x128xf32>
    tpu.vector_store %arg6[%c0_6, %c0_7], %15 {strides = array<i32>} : memref<8x128xf32, #tpu.memory_space<vmem>>, vector<8x128xf32>,
    %c0_i32_8 = arith.constant 0 : i32
    %17 = arith.cmpi eq, %arg2, %c0_i32_8 : i32
    %18 = arith.extui %17 : i1 to i32
    %c0_i32_9 = arith.constant 0 : i32
    %19 = arith.cmpi ne, %18, %c0_i32_9 : i32
    scf.if %19 {
      %c0_10 = arith.constant 0 : index
      %c0_11 = arith.constant 0 : index
      %20 = vector.load %arg6[%c0_10, %c0_11] : memref<8x128xf32, #tpu.memory_space<vmem>>, vector<8x128xf32>
      %c0_12 = arith.constant 0 : index
      %c0_13 = arith.constant 0 : index
      %21 = vector.load %arg5[%c0_12, %c0_13] : memref<8x128xf32, #tpu.memory_space<vmem>>, vector<8x128xf32>
      tpu.vector_store %arg5[%c0_12, %c0_13], %20 {strides = array<i32>} : memref<8x128xf32, #tpu.memory_space<vmem>>, vector<8x128xf32>,
    } else {
    }
    return
  }
  func.func @transform_0(%arg0: i32, %arg1: i32, %arg2: i32) -> (i32, i32) {
    %c0_i32 = arith.constant 0 : i32
    %c0_i32_0 = arith.constant 0 : i32
    return %c0_i32, %arg2 : i32, i32
  }
  func.func @transform_1(%arg0: i32, %arg1: i32, %arg2: i32) -> (i32, i32) {
    %c0_i32 = arith.constant 0 : i32
    return %arg2, %arg1 : i32, i32
  }
  func.func @transform_2(%arg0: i32, %arg1: i32, %arg2: i32) -> (i32, i32) {
    %c0_i32 = arith.constant 0 : i32
    return %arg0, %arg1 : i32, i32
  }
}

</mosaic_0001>

<bundles_post_ra>
// kernel: tpu_custom_call.1
= control target key start
LH: loop header
LB: loop body
LE: loop exit
PB: predicated region body
PF: predicated region fallthrough
CT: control target
= control target key end

     0   :  { %7 = vsyncpa [#allocation4], 0  ;;  %s393_s0 = inlined_call_operand.hbm [shape: s32[1,128], index: 0, kind: input, shape index: {}]   ;;  %s394_s1 = inlined_call_operand.hbm [shape: f32[128,128], index: 1, kind: input, shape index: {}]   ;;  %s395_s2 = inlined_call_operand.hbm [shape: f32[8,128], index: 2, kind: output, shape index: {}]  }
   0x1   :  { %8 = vsyncpa [#allocation7], 0 }
   0x2   :  { %9 = vsyncpa [#allocation5], 0  ;;  %s326_s9 = smov [#allocation3]   ;;  %s327_s11 = smov [#allocation6]  }
   0x3   :  { %s16_s10 = sshll.u32 %s326_s9, 4  ;;  %s25_s12 = sshll.u32 %s327_s11, 4  ;;  %s17_s10 = int_to_ptr.vmem [resolvable:$true] %s16_s10  ;;  %s350_s12 = int_to_ptr.vmem [resolvable:$true] %s25_s12 }
   0x4   :  { %s254_s15 = scalar_lea.hbm %s393_s0, 16 }
   0x5   :  { %p255_p0 = scmp.ne.s32.totalorder %s393_s0, %s254_s15  ;;  %p258_p1 = scmp.lt.u32.totalorder %s254_s15, %s393_s0 }
   0x7   :  { %p260_p2 = pnand %p258_p1, %p255_p0 }
   0x9   :  { %263 = shalt.err (!%p260_p2)
}
   0xa   :  { %s264_s20 = scalar_lea.vmem %s17_s10, 16  ;;  %s268_s21 = scalar_lea.vmem %s17_s10, 32 }
   0xb   :  { %p265_p3 = scmp.ne.s32.totalorder %s17_s10, %s264_s20  ;;  %p269_p4 = scmp.lt.s32.totalorder %s17_s10, %s17_s10 }
   0xc   :  { %p270_p5 = scmp.lt.s32.totalorder %s268_s21, %s264_s20 }
   0xe   :  { %p271_p6 = por %p270_p5, %p269_p4 }
  0x10   :  { %p272_p7 = pnand %p271_p6, %p265_p3 }
  0x12   :  { %275 = shalt.err (!%p272_p7)
}
  0x13   :  { %19 = dma.hbm_to_vmem [thread:$0]  %s393_s0, 16, %s17_s10, [#allocation4]  }
  0x14   :  { %s276_s26 = scalar_lea.hbm %s394_s1, 2048 }
  0x15   :  { %p277_p8 = scmp.ne.s32.totalorder %s394_s1, %s276_s26  ;;  %p280_p9 = scmp.lt.u32.totalorder %s276_s26, %s394_s1 }
  0x17   :  { %p282_p10 = pnand %p280_p9, %p277_p8 }
  0x19   :  { %285 = shalt.err (!%p282_p10)
}
  0x1a   :  { %s286_s3 = scalar_lea.vmem %s350_s12, 2048  ;;  %p291_p12 = scmp.lt.s32.totalorder %s350_s12, %s350_s12 }
  0x1b   :  { %p287_p11 = scmp.ne.s32.totalorder %s350_s12, %s286_s3  ;;  %p292_p13 = scmp.lt.s32.totalorder %s286_s3, %s286_s3 }
  0x1d   :  { %p293_p0 = por %p292_p13, %p291_p12 }
  0x1f   :  { %p294_p1 = pnand %p293_p0, %p287_p11 }
  0x21   :  { %297 = shalt.err (!%p294_p1)
}
  0x22   :  { %s328_s0 = smov 128   ;;  %s329_s4 = smov 8  }
  0x23   :  { %31 = dma.hbm_to_vmem [thread:$0]  %s394_s1, 2048, %s350_s12, [#allocation7], %s328_s0, %s328_s0, %s329_s4  }
  0x24   :  { %320 = dma.done.wait [#allocation4], 16  }
  0x25   :  { %321 = vsyncadd [#allocation4], 4294967280 }
  0x26   :  { %322 = dma.done.wait [#allocation7], 2048  }
  0x27   :  { %323 = vsyncadd [#allocation7], 4294965248  ;;  %v330_v0 = vmov 0.0|0.0   ;;  %vm331_vm0 = vmmov 0   ;;  %v332_v1 = vmov 0.0   ;;  %v57_v2 = vld [vmem:[#allocation6] sm:$0xff]  ;;  %v44_v23 = vlaneseq }
  0x28   :  { %221 = vmatprep.subr.bf16.mxu0 %v330_v0  ;;  %218 = vmatprep.mubr.msk.f32.mxu0 %vm331_vm0, %v332_v1  ;;  %v58_v3 = vld [vmem:[#allocation6 + $0x8] sm:$0xff]  ;;  %v59_v4 = vld [vmem:[#allocation6 + $0x10] sm:$0xff]  ;;  %v60_v6 = vld [vmem:[#allocation6 + $0x18] sm:$0xff]  ;;  %v333_v29 = vmov 1.0   ;;  %s334_s1 = smov [#allocation8]  }
  0x29   :  { %v222_v5 = vpack.c.bf16 %v58_v3, %v57_v2  ;;  %v225_v7 = vpack.c.bf16 %v60_v6, %v59_v4  ;;  %v61_v8 = vld [vmem:[#allocation6 + $0x20] sm:$0xff]  ;;  %v62_v9 = vld [vmem:[#allocation6 + $0x28] sm:$0xff]  ;;  %v63_v11 = vld [vmem:[#allocation6 + $0x30] sm:$0xff]  ;;  %v45_v27 = vshrl.u32 %v44_v23, 7  ;;  %s156_s7 = sshll.u32 %s334_s1, 4  ;;  %s157_s7 = int_to_ptr.vmem [resolvable:$true] %s156_s7 }
  0x2a   :  { %v228_v10 = vpack.c.bf16 %v62_v9, %v61_v8  ;;  %v64_v12 = vld [vmem:[#allocation6 + $0x38] sm:$0xff]  ;;  %v65_v14 = vld [vmem:[#allocation6 + $0x40] sm:$0xff]  ;;  %v66_v15 = vld [vmem:[#allocation6 + $0x48] sm:$0xff]  ;;  %s298_s8 = scalar_lea.vmem %s157_s7, 128  ;;  %p303_p3 = scmp.lt.s32.totalorder %s157_s7, %s157_s7 }
  0x2b   :  { %223 = vmatpush3.bf16.msra.mxu0 %v222_v5  ;;  %v231_v13 = vpack.c.bf16 %v64_v12, %v63_v11  ;;  %v234_v16 = vpack.c.bf16 %v66_v15, %v65_v14  ;;  %v67_v17 = vld [vmem:[#allocation6 + $0x50] sm:$0xff]  ;;  %v68_v18 = vld [vmem:[#allocation6 + $0x58] sm:$0xff]  ;;  %v69_v20 = vld [vmem:[#allocation6 + $0x60] sm:$0xff]  ;;  %p299_p2 = scmp.ne.s32.totalorder %s157_s7, %s298_s8  ;;  %p304_p4 = scmp.lt.s32.totalorder %s298_s8, %s298_s8 }
  0x2c   :  { %224 = vmatprep.subr.bf16.mxu0 %v330_v0  ;;  %v237_v19 = vpack.c.bf16 %v68_v18, %v67_v17  ;;  %v70_v21 = vld [vmem:[#allocation6 + $0x68] sm:$0xff]  ;;  %v71_v24 = vld [vmem:[#allocation6 + $0x70] sm:$0xff]  ;;  %v72_v25 = vld [vmem:[#allocation6 + $0x78] sm:$0xff] }
  0x2d   :  { %v240_v22 = vpack.c.bf16 %v70_v21, %v69_v20  ;;  %v243_v26 = vpack.c.bf16 %v72_v25, %v71_v24  ;;  %v166_v28 = vld [vmem:[#allocation3] ss:$0 sm:$0xff]  ;;  %p305_p5 = por %p304_p4, %p303_p3 }
  0x2e   :  { %vm53_vm1 = vcmp.eq.s32.totalorder %v45_v27, %v166_v28 }
  0x2f   :  { %226 = vmatpush3.bf16.msra.mxu0 %v225_v7  ;;  %p306_p6 = pnand %p305_p5, %p299_p2 }
  0x30   :  { %227 = vmatprep.subr.bf16.mxu0 %v330_v0 }
  0x33   :  { %229 = vmatpush3.bf16.msra.mxu0 %v228_v10 }
  0x34   :  { %230 = vmatprep.subr.bf16.mxu0 %v330_v0 }
  0x37   :  { %232 = vmatpush3.bf16.msra.mxu0 %v231_v13 }
  0x38   :  { %233 = vmatprep.subr.bf16.mxu0 %v330_v0 }
  0x3b   :  { %235 = vmatpush3.bf16.msra.mxu0 %v234_v16 }
  0x3c   :  { %236 = vmatprep.subr.bf16.mxu0 %v330_v0 }
  0x3f   :  { %238 = vmatpush3.bf16.msra.mxu0 %v237_v19 }
  0x40   :  { %239 = vmatprep.subr.bf16.mxu0 %v330_v0 }
  0x43   :  { %241 = vmatpush3.bf16.msra.mxu0 %v240_v22 }
  0x44   :  { %242 = vmatprep.subr.bf16.mxu0 %v330_v0 }
  0x47   :  { %244 = vmatpush3.bf16.msra.mxu0 %v243_v26 }
  0x4a   :  { %219 = vmatmul.mubr.msk.f32.vlgmr.msra.gmra.mrb[0].mxu0 %vm53_vm1, %v333_v29 }
 0x11d   :  { %v139_v30 = vpop.f32.mrb[0].mxu0 }
 0x11e   :  { %149 = vst [vmem:[#allocation8] sm:$0xff] %v139_v30  ;;  %v220_v31 = vpop.f32.mrb[1].mxu0 }
 0x11f   :  { %309 = shalt.err (!%p306_p6)
}
 0x120   :  { %s310_s11 = scalar_lea.hbm %s395_s2, 128 }
 0x121   :  { %p311_p7 = scmp.ne.s32.totalorder %s395_s2, %s310_s11  ;;  %p314_p8 = scmp.lt.u32.totalorder %s310_s11, %s395_s2 }
 0x123   :  { %p316_p9 = pnand %p314_p8, %p311_p7 }
 0x125   :  { %319 = shalt.err (!%p316_p9)
}
 0x126   :  { %159 = dma.vmem_to_hbm [thread:$0]  %s157_s7, 128, %s395_s2, [#allocation5]  }
 0x127   :  { %324 = dma.done.wait [#allocation5], 128  }
 0x128   :  { %325 = vsyncadd [#allocation5], 4294967168 }
 0x129   :  { %163 = vsyncpa [#allocation4], 1 }
 0x12a   :  { %164 = vsyncpa [#allocation7], 1 }
 0x12b   :  { %165 = vsyncpa [#allocation5], 1 }

</bundles_post_ra>
